<compile_context>
chip_gen: v7x
topology: tpu7x:2x2x1
jax: 0.10.0
libtpu: 0.0.40
codegen_flags: <defaults>
</compile_context>

<pallas_src>
import functools

import jax
import jax.numpy as jnp
from jax.experimental import pallas as pl
from jax.experimental.pallas import tpu as pltpu


def _round_up(x, m):
    return -(-x // m) * m


def cnn_kernel(patch_ref, convw_ref, convb_ref, fcw_ref, fcb_ref, out_ref, *,
               bt, h_pad, h_out):
    # patch_ref: (bt*h_pad, K)   im2col rows (batch-major, time-minor)
    # convw_ref: (K, OC)         conv weight, KH taps merged along K
    # convb_ref: (1, OC)         conv bias (f32)
    # fcw_ref:   (OC, OUT_pad)   fc weight (f32, OUT padded to 128 lanes)
    # fcb_ref:   (1, OUT_pad)    fc bias   (f32)
    # out_ref:   (bt, OUT_pad)   f32
    oc = convw_ref.shape[1]

    # Conv2d(1, OC, (KH, E)) over every (batch, time) position as ONE 2-D MXU
    # matmul with M = bt*h_pad; f32 accumulation.
    conv = jnp.dot(patch_ref[...], convw_ref[...],
                   preferred_element_type=jnp.float32)          # (bt*h_pad, OC)
    conv = conv.reshape(bt, h_pad, oc)                          # h_pad % 8 == 0

    # Padded time rows hold zero patches -> conv == 0 could beat all-negative
    # real activations in the max; mask them out.
    if h_pad != h_out:
        t_idx = jax.lax.broadcasted_iota(jnp.int32, conv.shape, 1)
        conv = jnp.where(t_idx < h_out, conv, -jnp.inf)

    # max_pool1d over time on the RAW conv, then bias + ReLU (hoisted).
    pooled = jnp.max(conv, axis=1)                              # (bt, OC) f32
    act = jnp.maximum(pooled + convb_ref[...], 0.0)

    # Dropout is identity at inference. Final Linear in f32.
    out_ref[...] = (jnp.dot(act, fcw_ref[...],
                            preferred_element_type=jnp.float32)
                    + fcb_ref[...])


def cnn_forward(tokens, emb_table, conv_w, conv_b, fc_w, fc_b, *,
                stride, padding, batch_block=2048,
                compute_dtype=jnp.bfloat16,
                vmem_budget_bytes=24 * 1024 * 1024):
    B, S = tokens.shape
    E = emb_table.shape[1]
    KH, _, OC = conv_w.shape
    OUT = fc_w.shape[1]

    s_pad = S + 2 * padding
    h_out = (s_pad - KH) // stride + 1
    h_pad = _round_up(h_out, 8)          # keeps every block 8-sublane aligned
    K = KH * E                           # full last dim (no 128 zero-pad)

    # ---- XLA glue: embedding gather, zero pad, im2col ----
    emb = jnp.take(emb_table, tokens, axis=0)                       # (B, S, E)
    emb_pad = jnp.pad(emb, ((0, 0), (padding, padding), (0, 0)))    # (B, s_pad, E)
    win_idx = stride * jnp.arange(h_out)[:, None] + jnp.arange(KH)[None, :]
    patches = emb_pad[:, win_idx, :].reshape(B, h_out, K)           # (B, h_out, K)
    if h_pad != h_out:
        patches = jnp.pad(patches, ((0, 0), (0, h_pad - h_out), (0, 0)))

    # ---- batch blocking from a VMEM budget (double-buffered patch blocks) ----
    itemsize = jnp.dtype(compute_dtype).itemsize
    per_example_bytes = h_pad * K * itemsize
    bt_cap = max(1, vmem_budget_bytes // (2 * per_example_bytes))
    bt = min(B, batch_block, bt_cap)
    if B >= 16:                          # >= 2 blocks so v7x's 2 TCs both work
        bt = min(bt, -(-B // 2))
    if bt < B:                           # non-full out block needs 8-alignment
        bt = _round_up(bt, 8)
    nb = -(-B // bt)
    b_pad = nb * bt
    if b_pad != B:
        patches = jnp.pad(patches, ((0, b_pad - B), (0, 0), (0, 0)))

    # Flatten (batch, time) into the matmul M dimension; bf16 operands by default.
    patches2 = patches.reshape(b_pad * h_pad, K).astype(compute_dtype)
    convw2 = conv_w.reshape(K, OC).astype(compute_dtype)

    # Lane-dense output: pad OUT (and fc weight/bias) to 128 lanes.
    out_pad = _round_up(OUT, 128)
    fcw = fc_w.astype(jnp.float32)
    fcb = fc_b.reshape(1, OUT).astype(jnp.float32)
    if out_pad != OUT:
        fcw = jnp.pad(fcw, ((0, 0), (0, out_pad - OUT)))
        fcb = jnp.pad(fcb, ((0, 0), (0, out_pad - OUT)))

    kernel = functools.partial(cnn_kernel, bt=bt, h_pad=h_pad, h_out=h_out)

    out = pl.pallas_call(
        kernel,
        out_shape=jax.ShapeDtypeStruct((b_pad, out_pad), jnp.float32),
        grid=(nb,),
        in_specs=[
            pl.BlockSpec((bt * h_pad, K), lambda i: (i, 0)),   # im2col rows
            pl.BlockSpec((K, OC), lambda i: (0, 0)),           # conv weight
            pl.BlockSpec((1, OC), lambda i: (0, 0)),           # conv bias
            pl.BlockSpec((OC, out_pad), lambda i: (0, 0)),     # fc weight
            pl.BlockSpec((1, out_pad), lambda i: (0, 0)),      # fc bias
        ],
        out_specs=pl.BlockSpec((bt, out_pad), lambda i: (i, 0)),
        compiler_params=pltpu.CompilerParams(
            dimension_semantics=("parallel",),
            vmem_limit_bytes=64 * 1024 * 1024),
    )(patches2, convw2,
      conv_b.reshape(1, OC).astype(jnp.float32),
      fcw, fcb)

    return out[:B, :OUT]


def cnn_reference(tokens, emb_table, conv_w, conv_b, fc_w, fc_b, *, stride, padding):
    """Pure-JAX reference mirroring the PyTorch forward (eval mode)."""
    emb = jnp.take(emb_table, tokens, axis=0)
    emb_pad = jnp.pad(emb, ((0, 0), (padding, padding), (0, 0)))
    KH = conv_w.shape[0]
    s_pad = emb_pad.shape[1]
    h_out = (s_pad - KH) // stride + 1
    taps = []
    for t in range(h_out):
        win = emb_pad[:, t * stride:t * stride + KH, :]              # (B, KH, E)
        taps.append(jnp.einsum('bke,keo->bo', win, conv_w))
    conv = jnp.stack(taps, axis=1) + conv_b                          # (B, h_out, OC)
    act = jnp.maximum(conv, 0.0)
    pooled = jnp.max(act, axis=1)                                    # (B, OC)
    return pooled @ fc_w + fc_b


if __name__ == "__main__":
    # Small, deterministic synthetic configuration.
    vocab_size, emb_size, padding_idx = 50, 32, 0
    output_size, out_channels = 4, 8
    kernel_heights, stride, padding = 3, 1, 1
    B, S = 2, 8

    key = jax.random.PRNGKey(0)
    k_tok, k_emb, k_cw, k_cb, k_fw, k_fb, k_tok2 = jax.random.split(key, 7)

    tokens = jax.random.randint(k_tok, (B, S), 1, vocab_size, dtype=jnp.int32)

    # nn.Embedding: N(0, 1) init, padding_idx row zeroed.
    emb_table = jax.random.normal(k_emb, (vocab_size, emb_size), jnp.float32)
    emb_table = emb_table.at[padding_idx].set(0.0)

    # Conv2d(1, OC, (KH, E)) weight stored as (KH, E, OC); uniform init.
    fan_in_conv = 1 * kernel_heights * emb_size
    bound_c = 1.0 / (fan_in_conv ** 0.5)
    conv_w = jax.random.uniform(k_cw, (kernel_heights, emb_size, out_channels),
                                jnp.float32, -bound_c, bound_c)
    conv_b = jax.random.uniform(k_cb, (out_channels,), jnp.float32, -bound_c, bound_c)

    # Linear(OC, output_size) weight stored as (OC, OUT).
    bound_f = 1.0 / (out_channels ** 0.5)
    fc_w = jax.random.uniform(k_fw, (out_channels, output_size),
                              jnp.float32, -bound_f, bound_f)
    fc_b = jax.random.uniform(k_fb, (output_size,), jnp.float32, -bound_f, bound_f)

    ref = cnn_reference(tokens, emb_table, conv_w, conv_b, fc_w, fc_b,
                        stride=stride, padding=padding)

    # 1) f32 matmul operands: strict correctness check.
    out_f32 = cnn_forward(tokens, emb_table, conv_w, conv_b, fc_w, fc_b,
                          stride=stride, padding=padding,
                          compute_dtype=jnp.float32)
    out_f32 = jax.block_until_ready(out_f32)
    assert out_f32.shape == (B, output_size)
    assert jnp.allclose(out_f32, ref, atol=1e-4, rtol=1e-4)

    # 2) Default bf16 fast path (f32 accumulation in-kernel).
    out_bf16 = cnn_forward(tokens, emb_table, conv_w, conv_b, fc_w, fc_b,
                           stride=stride, padding=padding)
    out_bf16 = jax.block_until_ready(out_bf16)
    assert jnp.allclose(out_bf16, ref, atol=5e-2, rtol=5e-2)

    # 3) Exercise the padded-time -inf mask (h_out=6 < h_pad=8) and the
    #    multi-block grid path (B=16, batch_block=8 -> 2 "parallel" blocks).
    B2 = 16
    tokens2 = jax.random.randint(k_tok2, (B2, S), 1, vocab_size, dtype=jnp.int32)
    ref2 = cnn_reference(tokens2, emb_table, conv_w, conv_b, fc_w, fc_b,
                         stride=stride, padding=0)
    out2 = cnn_forward(tokens2, emb_table, conv_w, conv_b, fc_w, fc_b,
                       stride=stride, padding=0, batch_block=8)
    out2 = jax.block_until_ready(out2)
    assert out2.shape == (B2, output_size)
    assert jnp.allclose(out2, ref2, atol=5e-2, rtol=5e-2)

    print("KERNEL_OK")
</pallas_src>

<mosaic_0001>
module attributes {stable_mosaic.version = 11 : i64} {
  func.func @cnn_kernel(%arg0: i32, %arg1: memref<16x96xf32, #tpu.memory_space<vmem>>, %arg2: memref<96x8xf32, #tpu.memory_space<vmem>>, %arg3: memref<1x8xf32, #tpu.memory_space<vmem>>, %arg4: memref<8x128xf32, #tpu.memory_space<vmem>>, %arg5: memref<1x128xf32, #tpu.memory_space<vmem>>, %arg6: memref<2x128xf32, #tpu.memory_space<vmem>>) attributes {dimension_semantics = [#tpu.dimension_semantics<parallel>], iteration_bounds = array<i64: 1>, scalar_prefetch = 0 : i64, scratch_operands = 0 : i64, tpu.core_type = #tpu.core_type<tc>, window_params = [{transform_indices = @transform_0, window_bounds = array<i64: 16, 96>}, {pipeline_mode = #tpu.pipeline_mode<synchronous>, transform_indices = @transform_1, window_bounds = array<i64: 96, 8>}, {pipeline_mode = #tpu.pipeline_mode<synchronous>, transform_indices = @transform_2, window_bounds = array<i64: 1, 8>}, {pipeline_mode = #tpu.pipeline_mode<synchronous>, transform_indices = @transform_3, window_bounds = array<i64: 8, 128>}, {pipeline_mode = #tpu.pipeline_mode<synchronous>, transform_indices = @transform_4, window_bounds = array<i64: 1, 128>}, {transform_indices = @transform_5, window_bounds = array<i64: 2, 128>}]} {
    %c0 = arith.constant 0 : index
    %c0_0 = arith.constant 0 : index
    %0 = vector.load %arg1[%c0, %c0_0] : memref<16x96xf32, #tpu.memory_space<vmem>>, vector<16x96xf32>
    %c0_1 = arith.constant 0 : index
    %c0_2 = arith.constant 0 : index
    %1 = vector.load %arg2[%c0_1, %c0_2] : memref<96x8xf32, #tpu.memory_space<vmem>>, vector<96x8xf32>
    %cst = arith.constant dense<0.000000e+00> : vector<16x8xf32>
    %2 = tpu.matmul %0, %1, %cst {dimension_numbers = #tpu.dot_dimension_numbers<[1], [0], [0], [1], [0, 0, 1, 1], [], []>} : vector<16x96xf32>, vector<96x8xf32>, vector<16x8xf32> -> vector<16x8xf32>
    %3 = vector.shape_cast %2 : vector<16x8xf32> to vector<2x8x8xf32>
    %cst_3 = arith.constant dense<0xFF800000> : vector<2x8xf32>
    %4 = vector.multi_reduction <maximumf>, %3, %cst_3 [1] : vector<2x8x8xf32> to vector<2x8xf32>
    %c0_4 = arith.constant 0 : index
    %c0_5 = arith.constant 0 : index
    %5 = vector.load %arg3[%c0_4, %c0_5] : memref<1x8xf32, #tpu.memory_space<vmem>>, vector<1x8xf32>
    %6 = vector.broadcast %5 : vector<1x8xf32> to vector<2x8xf32>
    %7 = arith.addf %4, %6 : vector<2x8xf32>
    %cst_6 = arith.constant 0.000000e+00 : f32
    %8 = vector.broadcast %cst_6 : f32 to vector<2x8xf32>
    %9 = arith.maximumf %7, %8 : vector<2x8xf32>
    %c0_7 = arith.constant 0 : index
    %c0_8 = arith.constant 0 : index
    %10 = vector.load %arg4[%c0_7, %c0_8] : memref<8x128xf32, #tpu.memory_space<vmem>>, vector<8x128xf32>
    %cst_9 = arith.constant dense<0.000000e+00> : vector<2x128xf32>
    %11 = tpu.matmul %9, %10, %cst_9 {dimension_numbers = #tpu.dot_dimension_numbers<[1], [0], [0], [1], [0, 0, 1, 1], [], []>} : vector<2x8xf32>, vector<8x128xf32>, vector<2x128xf32> -> vector<2x128xf32>
    %c0_10 = arith.constant 0 : index
    %c0_11 = arith.constant 0 : index
    %12 = vector.load %arg5[%c0_10, %c0_11] : memref<1x128xf32, #tpu.memory_space<vmem>>, vector<1x128xf32>
    %13 = vector.broadcast %12 : vector<1x128xf32> to vector<2x128xf32>
    %14 = arith.addf %11, %13 : vector<2x128xf32>
    %c0_12 = arith.constant 0 : index
    %c0_13 = arith.constant 0 : index
    %15 = vector.load %arg6[%c0_12, %c0_13] : memref<2x128xf32, #tpu.memory_space<vmem>>, vector<2x128xf32>
    tpu.vector_store %arg6[%c0_12, %c0_13], %14 {strides = array<i32>} : memref<2x128xf32, #tpu.memory_space<vmem>>, vector<2x128xf32>,
    return
  }
  func.func @transform_0(%arg0: i32) -> (i32, i32) {
    %c0_i32 = arith.constant 0 : i32
    %c0_i32_0 = arith.constant 0 : i32
    return %arg0, %c0_i32 : i32, i32
  }
  func.func @transform_1(%arg0: i32) -> (i32, i32) {
    %c0_i32 = arith.constant 0 : i32
    %c0_i32_0 = arith.constant 0 : i32
    %c0_i32_1 = arith.constant 0 : i32
    return %c0_i32, %c0_i32_0 : i32, i32
  }
  func.func @transform_2(%arg0: i32) -> (i32, i32) {
    %c0_i32 = arith.constant 0 : i32
    %c0_i32_0 = arith.constant 0 : i32
    %c0_i32_1 = arith.constant 0 : i32
    return %c0_i32, %c0_i32_0 : i32, i32
  }
  func.func @transform_3(%arg0: i32) -> (i32, i32) {
    %c0_i32 = arith.constant 0 : i32
    %c0_i32_0 = arith.constant 0 : i32
    %c0_i32_1 = arith.constant 0 : i32
    return %c0_i32, %c0_i32_0 : i32, i32
  }
  func.func @transform_4(%arg0: i32) -> (i32, i32) {
    %c0_i32 = arith.constant 0 : i32
    %c0_i32_0 = arith.constant 0 : i32
    %c0_i32_1 = arith.constant 0 : i32
    return %c0_i32, %c0_i32_0 : i32, i32
  }
  func.func @transform_5(%arg0: i32) -> (i32, i32) {
    %c0_i32 = arith.constant 0 : i32
    %c0_i32_0 = arith.constant 0 : i32
    return %arg0, %c0_i32 : i32, i32
  }
}

</mosaic_0001>

<bundles_post_ra>
// kernel: tpu_custom_call.1
= control target key start
LH: loop header
LB: loop body
LE: loop exit
PB: predicated region body
PF: predicated region fallthrough
CT: control target
= control target key end

     0   :  { %10 = vsyncpa [#allocation3], 0  ;;  %s658_s0 = inlined_call_operand.hbm [shape: f32[16,96], index: 0, kind: input, shape index: {}]   ;;  %s659_s1 = inlined_call_operand.hbm [shape: f32[96,8], index: 1, kind: input, shape index: {}]   ;;  %s660_s2 = inlined_call_operand.hbm [shape: f32[1,8], index: 2, kind: input, shape index: {}]   ;;  %s661_s3 = inlined_call_operand.hbm [shape: f32[8,128], index: 3, kind: input, shape index: {}]   ;;  %s662_s4 = inlined_call_operand.hbm [shape: f32[1,128], index: 4, kind: input, shape index: {}]   ;;  %s663_s5 = inlined_call_operand.hbm [shape: f32[2,128], index: 5, kind: output, shape index: {}]  }
   0x1   :  { %11 = vsyncpa [#allocation6], 0 }
   0x2   :  { %12 = vsyncpa [#allocation9], 0 }
   0x3   :  { %13 = vsyncpa [#allocation4], 0  ;;  %s535_s18 = smov [#allocation5]   ;;  %s536_s20 = smov [#allocation8]  }
   0x4   :  { %s31_s19 = sshll.u32 %s535_s18, 4  ;;  %s54_s21 = sshll.u32 %s536_s20, 4  ;;  %s32_s19 = int_to_ptr.vmem [resolvable:$true] %s31_s19  ;;  %s55_s21 = int_to_ptr.vmem [resolvable:$true] %s54_s21 }
   0x5   :  { %s395_s24 = scalar_lea.hbm %s659_s1, 1536 }
   0x6   :  { %p396_p0 = scmp.ne.s32.totalorder %s659_s1, %s395_s24  ;;  %p399_p1 = scmp.lt.u32.totalorder %s395_s24, %s659_s1 }
   0x8   :  { %p401_p2 = pnand %p399_p1, %p396_p0 }
   0xa   :  { %404 = shalt.err (!%p401_p2)
}
   0xb   :  { %s405_s29 = scalar_lea.vmem %s32_s19, 1536  ;;  %p410_p4 = scmp.lt.s32.totalorder %s32_s19, %s32_s19 }
   0xc   :  { %p406_p3 = scmp.ne.s32.totalorder %s32_s19, %s405_s29  ;;  %p411_p5 = scmp.lt.s32.totalorder %s405_s29, %s405_s29 }
   0xe   :  { %p412_p6 = por %p411_p5, %p410_p4 }
  0x10   :  { %p413_p7 = pnand %p412_p6, %p406_p3 }
  0x12   :  { %416 = shalt.err (!%p413_p7)
}
  0x13   :  { %s537_s30 = smov 128   ;;  %s538_s6 = smov 8  }
  0x14   :  { %37 = dma.hbm_to_vmem [thread:$0]  %s659_s1, 1536, %s32_s19, [#allocation6], %s537_s30, %s537_s30, %s538_s6  }
  0x15   :  { %s417_s11 = scalar_lea.hbm %s661_s3, 128 }
  0x16   :  { %p418_p8 = scmp.ne.s32.totalorder %s661_s3, %s417_s11  ;;  %p421_p9 = scmp.lt.u32.totalorder %s417_s11, %s661_s3 }
  0x18   :  { %p423_p10 = pnand %p421_p9, %p418_p8 }
  0x1a   :  { %426 = shalt.err (!%p423_p10)
}
  0x1b   :  { %s427_s16 = scalar_lea.vmem %s55_s21, 128  ;;  %p432_p12 = scmp.lt.s32.totalorder %s55_s21, %s55_s21 }
  0x1c   :  { %p428_p11 = scmp.ne.s32.totalorder %s55_s21, %s427_s16  ;;  %p433_p13 = scmp.lt.s32.totalorder %s427_s16, %s427_s16 }
  0x1e   :  { %p434_p0 = por %p433_p13, %p432_p12 }
  0x20   :  { %p435_p1 = pnand %p434_p0, %p428_p11 }
  0x22   :  { %438 = shalt.err (!%p435_p1)
}
  0x23   :  { %57 = dma.hbm_to_vmem [thread:$0]  %s661_s3, 128, %s55_s21, [#allocation9]  }
  0x24   :  { %s539_s18 = smov [#allocation2]   ;;  %s540_s20 = smov [#allocation7]  }
  0x25   :  { %s19_s19 = sshll.u32 %s539_s18, 4  ;;  %s44_s22 = sshll.u32 %s540_s20, 4  ;;  %s20_s19 = int_to_ptr.vmem [resolvable:$true] %s19_s19  ;;  %s45_s22 = int_to_ptr.vmem [resolvable:$true] %s44_s22 }
  0x26   :  { %s439_s25 = scalar_lea.hbm %s658_s0, 256 }
  0x27   :  { %p440_p2 = scmp.ne.s32.totalorder %s658_s0, %s439_s25  ;;  %p443_p3 = scmp.lt.u32.totalorder %s439_s25, %s658_s0 }
  0x29   :  { %p445_p4 = pnand %p443_p3, %p440_p2 }
  0x2b   :  { %448 = shalt.err (!%p445_p4)
}
  0x2c   :  { %s449_s3 = scalar_lea.vmem %s20_s19, 256  ;;  %p454_p6 = scmp.lt.s32.totalorder %s20_s19, %s20_s19 }
  0x2d   :  { %p450_p5 = scmp.ne.s32.totalorder %s20_s19, %s449_s3  ;;  %p455_p7 = scmp.lt.s32.totalorder %s449_s3, %s449_s3 }
  0x2f   :  { %p456_p8 = por %p455_p7, %p454_p6 }
  0x31   :  { %p457_p9 = pnand %p456_p8, %p450_p5 }
  0x33   :  { %460 = shalt.err (!%p457_p9)
}
  0x34   :  { %25 = dma.hbm_to_vmem [thread:$0]  %s658_s0, 256, %s20_s19, [#allocation3], %s537_s30, %s537_s30, %s538_s6  }
  0x35   :  { %s461_s10 = scalar_lea.hbm %s660_s2, 16 }
  0x36   :  { %p462_p10 = scmp.ne.s32.totalorder %s660_s2, %s461_s10  ;;  %p465_p11 = scmp.lt.u32.totalorder %s461_s10, %s660_s2 }
  0x38   :  { %p467_p12 = pnand %p465_p11, %p462_p10 }
  0x3a   :  { %470 = shalt.err (!%p467_p12)
}
  0x3b   :  { %s471_s15 = scalar_lea.vmem %s45_s22, 16  ;;  %s475_s16 = scalar_lea.vmem %s45_s22, 32 }
  0x3c   :  { %p472_p13 = scmp.ne.s32.totalorder %s45_s22, %s471_s15  ;;  %p476_p0 = scmp.lt.s32.totalorder %s45_s22, %s45_s22 }
  0x3d   :  { %p477_p1 = scmp.lt.s32.totalorder %s475_s16, %s471_s15 }
  0x3f   :  { %p478_p2 = por %p477_p1, %p476_p0 }
  0x41   :  { %p479_p3 = pnand %p478_p2, %p472_p13 }
  0x43   :  { %482 = shalt.err (!%p479_p3)
}
  0x44   :  { %47 = dma.hbm_to_vmem [thread:$0]  %s660_s2, 16, %s45_s22, [#allocation6]  }
  0x45   :  { %s541_s6 = smov [#allocation10]   ;;  %s483_s19 = scalar_lea.hbm %s662_s4, 16 }
  0x46   :  { %s64_s1 = sshll.u32 %s541_s6, 4  ;;  %p484_p4 = scmp.ne.s32.totalorder %s662_s4, %s483_s19  ;;  %s65_s1 = int_to_ptr.vmem [resolvable:$true] %s64_s1 }
  0x47   :  { %p487_p5 = scmp.lt.u32.totalorder %s483_s19, %s662_s4 }
  0x49   :  { %p489_p6 = pnand %p487_p5, %p484_p4 }
  0x4b   :  { %492 = shalt.err (!%p489_p6)
}
  0x4c   :  { %s493_s26 = scalar_lea.vmem %s65_s1, 16  ;;  %s497_s2 = scalar_lea.vmem %s65_s1, 32 }
  0x4d   :  { %p494_p7 = scmp.ne.s32.totalorder %s65_s1, %s493_s26  ;;  %p498_p8 = scmp.lt.s32.totalorder %s65_s1, %s65_s1 }
  0x4e   :  { %p499_p9 = scmp.lt.s32.totalorder %s497_s2, %s493_s26 }
  0x50   :  { %p500_p10 = por %p499_p9, %p498_p8 }
  0x52   :  { %p501_p11 = pnand %p500_p10, %p494_p7 }
  0x54   :  { %504 = shalt.err (!%p501_p11)
}
  0x55   :  { %67 = dma.hbm_to_vmem [thread:$0]  %s662_s4, 16, %s65_s1, [#allocation9]  }
  0x56   :  { %527 = dma.done.wait [#allocation3], 256  }
  0x57   :  { %528 = vsyncadd [#allocation3], 4294967040 }
  0x58   :  { %529 = dma.done.wait [#allocation6], 1552  }
  0x59   :  { %530 = vsyncadd [#allocation6], 4294965744 }
  0x5a   :  { %531 = dma.done.wait [#allocation9], 144  }
  0x5b   :  { %532 = vsyncadd [#allocation9], 4294967152  ;;  %v85_v0 = vld [vmem:[#allocation5] sm:$0xff]  ;;  %v86_v1 = vld [vmem:[#allocation5 + $0x8] sm:$0xff]  ;;  %vm97_vm0 = vcmask 785408   ;;  %v542_v21 = vmov 0.0  }
  0x5c   :  { %v87_v2 = vld [vmem:[#allocation5 + $0x10] sm:$0xff]  ;;  %v361_v3 = vpack.c.bf16 %v86_v1, %v85_v0  ;;  %v88_v4 = vld [vmem:[#allocation5 + $0x18] sm:$0xff]  ;;  %v89_v6 = vld [vmem:[#allocation5 + $0x20] sm:$0xff]  ;;  %356 = vmatprep.subr.mxu1 %v542_v21  ;;  %vm543_vm1 = vmmov 0   ;;  %vm179_vm2 = vcmask 64512   ;;  %vm216_vm3 = vcmask 1041409  }
  0x5d   :  { %v365_v5 = vpack.c.bf16 %v88_v4, %v87_v2  ;;  %v90_v7 = vld [vmem:[#allocation5 + $0x28] sm:$0xff]  ;;  %v83_v8 = vld [vmem:[#allocation2] sm:$0xff]  ;;  %v92_v11 = vld [vmem:[#allocation5 + $0x38] sm:$0xff]  ;;  %358 = vmatprep.mubr.msk.f32.mxu1 %vm543_vm1, %v542_v21  ;;  %s544_s4 = smov [#allocation11]  }
  0x5e   :  { %362 = vmatprep.subr.bf16.mxu0 %v361_v3  ;;  %v369_v9 = vpack.c.bf16 %v90_v7, %v89_v6  ;;  %353 = vmatprep.mubr.msk.f32.mxu0 %vm97_vm0, %v83_v8  ;;  %v91_v10 = vld [vmem:[#allocation5 + $0x30] sm:$0xff]  ;;  %v93_v13 = vld [vmem:[#allocation5 + $0x40] sm:$0xff]  ;;  %v94_v14 = vld [vmem:[#allocation5 + $0x48] sm:$0xff]  ;;  %s297_s28 = sshll.u32 %s544_s4, 4  ;;  %s298_s28 = int_to_ptr.vmem [resolvable:$true] %s297_s28 }
  0x5f   :  { %364 = vmatpush3.bf16.msra.mxu0 %v361_v3  ;;  %v373_v12 = vpack.c.bf16 %v92_v11, %v91_v10  ;;  %v377_v15 = vpack.c.bf16 %v94_v14, %v93_v13  ;;  %v95_v16 = vld [vmem:[#allocation5 + $0x50] sm:$0xff]  ;;  %v96_v17 = vld [vmem:[#allocation5 + $0x58] sm:$0xff]  ;;  %v205_v20 = vld [vmem:[#allocation8] sm:$0xff]  ;;  %s505_s29 = scalar_lea.vmem %s298_s28, 32  ;;  %p510_p13 = scmp.lt.s32.totalorder %s298_s28, %s298_s28 }
  0x60   :  { %366 = vmatprep.subr.bf16.mxu0 %v365_v5  ;;  %v381_v18 = vpack.c.bf16 %v96_v17, %v95_v16  ;;  %v84_v19 = vld [vmem:[#allocation2 + $0x8] sm:$0xff]  ;;  %357 = vmatpush3.msra.mxu1 %v205_v20  ;;  %v310_v35 = vld [vmem:[#allocation7] ss:$0 sm:$0xff]  ;;  %v311_v45 = vld [vmem:[#allocation10] ss:$0 sm:$0xff]  ;;  %p506_p12 = scmp.ne.s32.totalorder %s298_s28, %s505_s29  ;;  %p511_p0 = scmp.lt.s32.totalorder %s505_s29, %s505_s29 }
  0x62   :  { %p512_p1 = por %p511_p0, %p510_p13 }
  0x63   :  { %368 = vmatpush3.bf16.msra.mxu0 %v365_v5 }
  0x64   :  { %370 = vmatprep.subr.bf16.mxu0 %v369_v9  ;;  %p513_p2 = pnand %p512_p1, %p506_p12 }
  0x67   :  { %372 = vmatpush3.bf16.msra.mxu0 %v369_v9 }
  0x68   :  { %374 = vmatprep.subr.bf16.mxu0 %v373_v12 }
  0x6b   :  { %376 = vmatpush3.bf16.msra.mxu0 %v373_v12 }
  0x6c   :  { %378 = vmatprep.subr.bf16.mxu0 %v377_v15 }
  0x6f   :  { %380 = vmatpush3.bf16.msra.mxu0 %v377_v15 }
  0x70   :  { %382 = vmatprep.subr.bf16.mxu0 %v381_v18 }
  0x73   :  { %384 = vmatpush3.bf16.msra.mxu0 %v381_v18 }
  0x76   :  { %354 = vmatmul.mubr.msk.f32.vlgmr.msra.gmra.mrb[0].mxu0 %vm97_vm0, %v84_v19 }
 0x149   :  { %v355_v22 = vpop.f32.mrb[0].mxu0 }
 0x14a   :  { %v187_v23 = vsel %vm179_vm2, %v355_v22, -inf  ;;  %v170_v24 = vpop.f32.mrb[1].mxu0 }
 0x14b   :  { %v188_v25 = vrot.slane %v187_v23, 4  ;;  %v180_v26 = vsel %vm179_vm2, %v170_v24, -inf }
 0x14c   :  { %v181_v27 = vrot.slane %v180_v26, 4 }
 0x14d   :  { %v189_v28 = vmax.f32 %v187_v23, %v188_v25 }
 0x14e   :  { %v182_v29 = vmax.f32 %v180_v26, %v181_v27 }
 0x14f   :  { %v190_v30 = vrot.slane %v189_v28, 2 }
 0x150   :  { %v183_v31 = vrot.slane %v182_v29, 2 }
 0x151   :  { %v191_v32 = vmax.f32 %v189_v28, %v190_v30 }
 0x152   :  { %v184_v33 = vmax.f32 %v182_v29, %v183_v31 }
 0x153   :  { %v192_v34 = vrot.slane %v191_v32, 1 }
 0x154   :  { %v185_v36 = vrot.slane %v184_v33, 1 }
 0x155   :  { %v193_v37 = vmax.f32 %v191_v32, %v192_v34 }
 0x156   :  { %v186_v38 = vmax.f32 %v184_v33, %v185_v36 }
 0x157   :  { %v202_v39 = vadd.f32 %v310_v35, %v193_v37 }
 0x158   :  { %v201_v40 = vadd.f32 %v310_v35, %v186_v38 }
 0x159   :  { %v204_v41 = vmax.f32 %v202_v39, 0.0 }
 0x15a   :  { %v203_v42 = vmax.f32 %v201_v40, 0.0 }
 0x15b   :  { %v215_v43 = vrot.slane %v204_v41, 7 }
 0x15d   :  { %v217_v44 = vsel %vm216_vm3, %v215_v43, %v203_v42 }
 0x15e   :  { %359 = vmatmul.mubr.msk.f32.vlgmr.msra.gmra.mrb[0].mxu1 %vm179_vm2, %v217_v44 }
 0x231   :  { %v286_v46 = vpop.f32.mrb[0].mxu1 }
 0x232   :  { %v287_v47 = vadd.f32 %v311_v45, %v286_v46  ;;  %v360_v48 = vpop.f32.mrb[1].mxu1 }
 0x234   :  { %290 = vst [vmem:[#allocation11] sm:$0x3] %v287_v47 }
 0x235   :  { %516 = shalt.err (!%p513_p2)
}
 0x236   :  { %s517_s7 = scalar_lea.hbm %s663_s5, 32 }
 0x237   :  { %p518_p3 = scmp.ne.s32.totalorder %s663_s5, %s517_s7  ;;  %p521_p4 = scmp.lt.u32.totalorder %s517_s7, %s663_s5 }
 0x239   :  { %p523_p5 = pnand %p521_p4, %p518_p3 }
 0x23b   :  { %526 = shalt.err (!%p523_p5)
}
 0x23c   :  { %300 = dma.vmem_to_hbm [thread:$0]  %s298_s28, 32, %s663_s5, [#allocation4]  }
 0x23d   :  { %533 = dma.done.wait [#allocation4], 32  }
 0x23e   :  { %534 = vsyncadd [#allocation4], 4294967264 }
 0x23f   :  { %304 = vsyncpa [#allocation3], 1 }
 0x240   :  { %305 = vsyncpa [#allocation6], 1 }
 0x241   :  { %306 = vsyncpa [#allocation9], 1 }
 0x242   :  { %307 = vsyncpa [#allocation4], 1 }

</bundles_post_ra>
